<compile_context>
chip_gen: v7x
topology: tpu7x:2x2x1
jax: 0.10.0
libtpu: 0.0.40
codegen_flags: <defaults>
</compile_context>

<pallas_src>
import jax
import jax.numpy as jnp
from jax.experimental import pallas as pl
from jax.experimental.pallas import tpu as pltpu

_LANE = 128  # TPU lane width (last-dim vreg width)
_SUBLANE = 8


def _round_up(x, mult):
    return ((x + mult - 1) // mult) * mult


def _mlp_kernel(x_ref, w0_ref, w1_ref, w2_ref, w3_ref, w4_ref, o_ref):
    """All 5 matmuls + 4 ReLUs for one batch tile. Weights are resident blocks."""
    dt = w0_ref.dtype  # MXU compute dtype (f32 or bf16); accumulation is f32.
    x = x_ref[...].astype(dt)
    # Layer 0: (TB, n) @ (n, m_pad) -> (TB, m_pad)
    h = jnp.dot(x, w0_ref[...], preferred_element_type=jnp.float32)
    h = jnp.maximum(h, 0.0).astype(dt)  # ReLU on f32 accumulator, then downcast
    # Hidden layers 1..3: (TB, m_pad) @ (m_pad, m_pad)
    h = jnp.maximum(
        jnp.dot(h, w1_ref[...], preferred_element_type=jnp.float32), 0.0
    ).astype(dt)
    h = jnp.maximum(
        jnp.dot(h, w2_ref[...], preferred_element_type=jnp.float32), 0.0
    ).astype(dt)
    h = jnp.maximum(
        jnp.dot(h, w3_ref[...], preferred_element_type=jnp.float32), 0.0
    ).astype(dt)
    # Final layer 4 (no ReLU): (TB, m_pad) @ (m_pad, n_pad) -> lane-dense output
    o_ref[...] = jnp.dot(
        h, w4_ref[...], preferred_element_type=jnp.float32
    ).astype(o_ref.dtype)


def prepare_params(weights, compute_dtype=jnp.float32):
    """One-time parameter prep (hoisted out of the per-call path).

    Takes 5 PyTorch-layout (out_features, in_features) matrices and returns
    (in, out)-layout matrices with out/hidden dims zero-padded to 128 lanes,
    cast to the MXU compute dtype (f32 or bf16).
    """
    assert len(weights) == 5
    hidden_size, input_size = weights[0].shape
    m_pad = _round_up(hidden_size, _LANE)
    n_pad = _round_up(input_size, _LANE)

    prepped = []
    # Layer 0: (m, n) -> (n, m_pad)
    w0 = jnp.transpose(weights[0])
    prepped.append(
        jnp.pad(w0, ((0, 0), (0, m_pad - hidden_size))).astype(compute_dtype)
    )
    # Hidden layers: (m, m) -> (m_pad, m_pad). Zero rows/cols keep ReLU'd pads at 0.
    for w in weights[1:-1]:
        wt = jnp.transpose(w)
        prepped.append(
            jnp.pad(
                wt, ((0, m_pad - hidden_size), (0, m_pad - hidden_size))
            ).astype(compute_dtype)
        )
    # Final layer: (n, m) -> (m_pad, n_pad)
    wl = jnp.transpose(weights[-1])
    prepped.append(
        jnp.pad(
            wl, ((0, m_pad - hidden_size), (0, n_pad - input_size))
        ).astype(compute_dtype)
    )
    return prepped


def deeptimedelay_nn(x, params, *, block_b=128):
    """Forward pass. `params` come from prepare_params (already transposed/padded)."""
    assert len(params) == 5
    batch, n = x.shape
    assert params[0].shape[0] == n, "input size mismatch"
    m_pad = params[0].shape[1]
    n_pad = params[4].shape[1]

    # Batch tiling: biggest tile <= block_b (sublane-aligned), pad batch to a
    # whole number of tiles (padding is sliced off afterwards).
    tb = min(block_b, _round_up(batch, _SUBLANE))
    b_pad = _round_up(batch, tb)
    if b_pad != batch:
        x = jnp.pad(x, ((0, b_pad - batch), (0, 0)))
    nb = b_pad // tb

    itemsize = jnp.dtype(x.dtype).itemsize
    flops = 2 * b_pad * (n * m_pad + 3 * m_pad * m_pad + m_pad * n_pad)
    bytes_accessed = (
        b_pad * n * itemsize
        + sum(int(w.size) * jnp.dtype(w.dtype).itemsize for w in params)
        + b_pad * n_pad * 4
    )

    out = pl.pallas_call(
        _mlp_kernel,
        out_shape=jax.ShapeDtypeStruct((b_pad, n_pad), jnp.float32),
        grid=(nb,),
        in_specs=[
            pl.BlockSpec((tb, n), lambda i: (i, 0)),           # x: tiled on batch only
            pl.BlockSpec(params[0].shape, lambda i: (0, 0)),   # weights: VMEM-resident
            pl.BlockSpec(params[1].shape, lambda i: (0, 0)),
            pl.BlockSpec(params[2].shape, lambda i: (0, 0)),
            pl.BlockSpec(params[3].shape, lambda i: (0, 0)),
            pl.BlockSpec(params[4].shape, lambda i: (0, 0)),
        ],
        out_specs=pl.BlockSpec((tb, n_pad), lambda i: (i, 0)),  # lane-dense output
        compiler_params=pltpu.CompilerParams(
            dimension_semantics=("parallel",)  # shards batch tiles across TCs on v7x
        ),
        cost_estimate=pl.CostEstimate(
            flops=flops, transcendentals=0, bytes_accessed=bytes_accessed
        ),
    )(x, *params)

    # Drop batch + lane padding (kept inside the kernel for unmasked stores).
    return out[:batch, :n]


def _init_weights(key, input_size, hidden_size, layers_size=5):
    """Deterministic init mimicking nn.Linear default (uniform +/-1/sqrt(fan_in)),
    in PyTorch (out_features, in_features) layout."""
    dims = (
        [(hidden_size, input_size)]
        + [(hidden_size, hidden_size)] * (layers_size - 2)
        + [(input_size, hidden_size)]
    )
    keys = jax.random.split(key, len(dims))
    weights = []
    for k, (out_f, in_f) in zip(keys, dims):
        bound = 1.0 / jnp.sqrt(jnp.float32(in_f))
        weights.append(
            jax.random.uniform(
                k, (out_f, in_f), dtype=jnp.float32, minval=-bound, maxval=bound
            )
        )
    return weights


def _reference(x, weights):
    h = x
    for i, w in enumerate(weights):
        h = h @ w.T
        if i != len(weights) - 1:
            h = jnp.maximum(h, 0.0)
    return h


if __name__ == "__main__":
    input_size = 16
    hidden_size = 32
    # Time-delay NN is evaluated over many time steps -> batch them into one
    # call to amortize launch overhead and MXU fill latency. 256 steps here
    # still compiles/runs fast while exercising a >1 batch-tile grid.
    batch = 256

    key = jax.random.PRNGKey(0)
    kx, kw = jax.random.split(key)
    x = jax.random.normal(kx, (batch, input_size), dtype=jnp.float32)
    weights = _init_weights(kw, input_size, hidden_size, layers_size=5)
    ref = _reference(x, weights)

    # f32 compute path (v5e-friendly): tight tolerance.
    params_f32 = prepare_params(weights, compute_dtype=jnp.float32)
    out = jax.block_until_ready(deeptimedelay_nn(x, params_f32))
    assert out.shape == (batch, input_size)
    assert jnp.allclose(out, ref, atol=1e-4, rtol=1e-4)

    # bf16 matmul operands with f32 accumulation (v6e / v7x MXU path).
    params_bf16 = prepare_params(weights, compute_dtype=jnp.bfloat16)
    out_bf16 = jax.block_until_ready(
        deeptimedelay_nn(x.astype(jnp.bfloat16), params_bf16)
    )
    assert out_bf16.shape == (batch, input_size)
    assert jnp.allclose(out_bf16, ref, atol=5e-2, rtol=5e-2)

    print("KERNEL_OK")
</pallas_src>

<mosaic_0001>
module attributes {stable_mosaic.version = 11 : i64} {
  func.func @_mlp_kernel(%arg0: i32, %arg1: memref<128x16xf32, #tpu.memory_space<vmem>>, %arg2: memref<16x128xf32, #tpu.memory_space<vmem>>, %arg3: memref<128x128xf32, #tpu.memory_space<vmem>>, %arg4: memref<128x128xf32, #tpu.memory_space<vmem>>, %arg5: memref<128x128xf32, #tpu.memory_space<vmem>>, %arg6: memref<128x128xf32, #tpu.memory_space<vmem>>, %arg7: memref<128x128xf32, #tpu.memory_space<vmem>>) attributes {dimension_semantics = [#tpu.dimension_semantics<parallel>], iteration_bounds = array<i64: 2>, scalar_prefetch = 0 : i64, scratch_operands = 0 : i64, tpu.core_type = #tpu.core_type<tc>, window_params = [{transform_indices = @transform_0, window_bounds = array<i64: 128, 16>}, {pipeline_mode = #tpu.pipeline_mode<synchronous>, transform_indices = @transform_1, window_bounds = array<i64: 16, 128>}, {pipeline_mode = #tpu.pipeline_mode<synchronous>, transform_indices = @transform_2, window_bounds = array<i64: 128, 128>}, {pipeline_mode = #tpu.pipeline_mode<synchronous>, transform_indices = @transform_3, window_bounds = array<i64: 128, 128>}, {pipeline_mode = #tpu.pipeline_mode<synchronous>, transform_indices = @transform_4, window_bounds = array<i64: 128, 128>}, {pipeline_mode = #tpu.pipeline_mode<synchronous>, transform_indices = @transform_5, window_bounds = array<i64: 128, 128>}, {transform_indices = @transform_6, window_bounds = array<i64: 128, 128>}]} {
    %c0 = arith.constant 0 : index
    %c0_0 = arith.constant 0 : index
    %0 = vector.load %arg1[%c0, %c0_0] : memref<128x16xf32, #tpu.memory_space<vmem>>, vector<128x16xf32>
    %c0_1 = arith.constant 0 : index
    %c0_2 = arith.constant 0 : index
    %1 = vector.load %arg2[%c0_1, %c0_2] : memref<16x128xf32, #tpu.memory_space<vmem>>, vector<16x128xf32>
    %cst = arith.constant dense<0.000000e+00> : vector<128x128xf32>
    %2 = tpu.matmul %0, %1, %cst {dimension_numbers = #tpu.dot_dimension_numbers<[1], [0], [0], [1], [0, 0, 1, 1], [], []>} : vector<128x16xf32>, vector<16x128xf32>, vector<128x128xf32> -> vector<128x128xf32>
    %cst_3 = arith.constant 0.000000e+00 : f32
    %3 = vector.broadcast %cst_3 : f32 to vector<128x128xf32>
    %4 = arith.maximumf %2, %3 : vector<128x128xf32>
    %c0_4 = arith.constant 0 : index
    %c0_5 = arith.constant 0 : index
    %5 = vector.load %arg3[%c0_4, %c0_5] : memref<128x128xf32, #tpu.memory_space<vmem>>, vector<128x128xf32>
    %cst_6 = arith.constant dense<0.000000e+00> : vector<128x128xf32>
    %6 = tpu.matmul %4, %5, %cst_6 {dimension_numbers = #tpu.dot_dimension_numbers<[1], [0], [0], [1], [0, 0, 1, 1], [], []>} : vector<128x128xf32>, vector<128x128xf32>, vector<128x128xf32> -> vector<128x128xf32>
    %cst_7 = arith.constant 0.000000e+00 : f32
    %7 = vector.broadcast %cst_7 : f32 to vector<128x128xf32>
    %8 = arith.maximumf %6, %7 : vector<128x128xf32>
    %c0_8 = arith.constant 0 : index
    %c0_9 = arith.constant 0 : index
    %9 = vector.load %arg4[%c0_8, %c0_9] : memref<128x128xf32, #tpu.memory_space<vmem>>, vector<128x128xf32>
    %cst_10 = arith.constant dense<0.000000e+00> : vector<128x128xf32>
    %10 = tpu.matmul %8, %9, %cst_10 {dimension_numbers = #tpu.dot_dimension_numbers<[1], [0], [0], [1], [0, 0, 1, 1], [], []>} : vector<128x128xf32>, vector<128x128xf32>, vector<128x128xf32> -> vector<128x128xf32>
    %cst_11 = arith.constant 0.000000e+00 : f32
    %11 = vector.broadcast %cst_11 : f32 to vector<128x128xf32>
    %12 = arith.maximumf %10, %11 : vector<128x128xf32>
    %c0_12 = arith.constant 0 : index
    %c0_13 = arith.constant 0 : index
    %13 = vector.load %arg5[%c0_12, %c0_13] : memref<128x128xf32, #tpu.memory_space<vmem>>, vector<128x128xf32>
    %cst_14 = arith.constant dense<0.000000e+00> : vector<128x128xf32>
    %14 = tpu.matmul %12, %13, %cst_14 {dimension_numbers = #tpu.dot_dimension_numbers<[1], [0], [0], [1], [0, 0, 1, 1], [], []>} : vector<128x128xf32>, vector<128x128xf32>, vector<128x128xf32> -> vector<128x128xf32>
    %cst_15 = arith.constant 0.000000e+00 : f32
    %15 = vector.broadcast %cst_15 : f32 to vector<128x128xf32>
    %16 = arith.maximumf %14, %15 : vector<128x128xf32>
    %c0_16 = arith.constant 0 : index
    %c0_17 = arith.constant 0 : index
    %17 = vector.load %arg6[%c0_16, %c0_17] : memref<128x128xf32, #tpu.memory_space<vmem>>, vector<128x128xf32>
    %cst_18 = arith.constant dense<0.000000e+00> : vector<128x128xf32>
    %18 = tpu.matmul %16, %17, %cst_18 {dimension_numbers = #tpu.dot_dimension_numbers<[1], [0], [0], [1], [0, 0, 1, 1], [], []>} : vector<128x128xf32>, vector<128x128xf32>, vector<128x128xf32> -> vector<128x128xf32>
    %c0_19 = arith.constant 0 : index
    %c0_20 = arith.constant 0 : index
    %19 = vector.load %arg7[%c0_19, %c0_20] : memref<128x128xf32, #tpu.memory_space<vmem>>, vector<128x128xf32>
    tpu.vector_store %arg7[%c0_19, %c0_20], %18 {strides = array<i32>} : memref<128x128xf32, #tpu.memory_space<vmem>>, vector<128x128xf32>,
    return
  }
  func.func @transform_0(%arg0: i32) -> (i32, i32) {
    %c0_i32 = arith.constant 0 : i32
    %c0_i32_0 = arith.constant 0 : i32
    return %arg0, %c0_i32 : i32, i32
  }
  func.func @transform_1(%arg0: i32) -> (i32, i32) {
    %c0_i32 = arith.constant 0 : i32
    %c0_i32_0 = arith.constant 0 : i32
    %c0_i32_1 = arith.constant 0 : i32
    return %c0_i32, %c0_i32_0 : i32, i32
  }
  func.func @transform_2(%arg0: i32) -> (i32, i32) {
    %c0_i32 = arith.constant 0 : i32
    %c0_i32_0 = arith.constant 0 : i32
    %c0_i32_1 = arith.constant 0 : i32
    return %c0_i32, %c0_i32_0 : i32, i32
  }
  func.func @transform_3(%arg0: i32) -> (i32, i32) {
    %c0_i32 = arith.constant 0 : i32
    %c0_i32_0 = arith.constant 0 : i32
    %c0_i32_1 = arith.constant 0 : i32
    return %c0_i32, %c0_i32_0 : i32, i32
  }
  func.func @transform_4(%arg0: i32) -> (i32, i32) {
    %c0_i32 = arith.constant 0 : i32
    %c0_i32_0 = arith.constant 0 : i32
    %c0_i32_1 = arith.constant 0 : i32
    return %c0_i32, %c0_i32_0 : i32, i32
  }
  func.func @transform_5(%arg0: i32) -> (i32, i32) {
    %c0_i32 = arith.constant 0 : i32
    %c0_i32_0 = arith.constant 0 : i32
    %c0_i32_1 = arith.constant 0 : i32
    return %c0_i32, %c0_i32_0 : i32, i32
  }
  func.func @transform_6(%arg0: i32) -> (i32, i32) {
    %c0_i32 = arith.constant 0 : i32
    %c0_i32_0 = arith.constant 0 : i32
    return %arg0, %c0_i32 : i32, i32
  }
}

</mosaic_0001>

<bundles_post_ra>
// kernel: tpu_custom_call.1
= control target key start
LH: loop header
LB: loop body
LE: loop exit
PB: predicated region body
PF: predicated region fallthrough
CT: control target
= control target key end

     0   :  { %11 = vsyncpa [#allocation3], 0  ;;  %s2447_s0 = inlined_call_operand.vmem [shape: f32[256,16], index: 0, kind: input, shape index: {}]   ;;  %s2448_s1 = inlined_call_operand.vmem [shape: f32[16,128], index: 1, kind: input, shape index: {}]   ;;  %s2449_s2 = inlined_call_operand.vmem [shape: f32[128,128], index: 2, kind: input, shape index: {}]   ;;  %s2450_s3 = inlined_call_operand.vmem [shape: f32[128,128], index: 3, kind: input, shape index: {}]   ;;  %s2451_s4 = inlined_call_operand.hbm [shape: f32[128,128], index: 4, kind: input, shape index: {}]   ;;  %s2452_s5 = inlined_call_operand.hbm [shape: f32[128,128], index: 5, kind: input, shape index: {}]   ;;  %s2453_s6 = inlined_call_operand.hbm [shape: f32[256,128], index: 6, kind: output, shape index: {}]  }
   0x1   :  { %12 = vsyncpa [#allocation6], 0 }
   0x2   :  { %13 = vsyncpa [#allocation4], 0 }
   0x3   :  { %15 = vsyncpa [#allocation4 + $0x1], 0  ;;  %s2114_s21 = smov 0   ;;  %s2116_s22 = smov 0  }
   0x4   :  { %s2118_s23 = smov 0   ;;  %s2120_s24 = smov 0  }
   0x5 LB: > { %s2135_s25 = sadd.s32 4294967295, %s2070_s24   ;;  %s1317_s26 = sadd.s32 4294967294, %s2070_s24   ;;  %s2070_s24 = sphi %s2120_s24, %s2471_s24   ;;  %s2066_s23 = sphi %s2118_s23, %s2470_s23   ;;  %s2062_s22 = sphi %s2116_s22, %s2469_s22   ;;  %s2058_s21 = sphi %s2114_s21, %s2468_s21  }
   0x6   : > { %s2139_s27 = sadd.s32 1, %s2070_s24   ;;  %s159_s28 = sadd.s32 1, %s2066_s23 }
   0x7   : > { %s156_s29 = ssub.s32 %s2070_s24, %s2139_s27  ;;  %p169_p0 = scmp.ne.s32.totalorder %s2066_s23, %s2062_s22 }
   0x8   : > { %p157_p1 = scmp.eq.s32.totalorder %s156_s29, 0  ;;  %p170_p2 = scmp.eq.s32.totalorder %s2135_s25, 1 }
   0x9   : > { %p175_p3 = scmp.ne.s32.totalorder %s2062_s22, %s2058_s21  ;;  %p176_p4 = scmp.eq.s32.totalorder %s1317_s26, 1 }
   0xa   : > { %s2150_s30 = scalar_select %p157_p1, %s2066_s23, %s159_s28  }
   0xb   : > { %p2152_p5 = por %p170_p2, %p169_p0  ;;  %p2156_p6 = por %p176_p4, %p175_p3 }
   0xc   : > { %p1318_p7 = scmp.ge.s32.totalorder %s2070_s24, 1  ;;  %p183_p8 = scmp.lt.s32.totalorder %s2070_s24, 3 }
   0xd   : > { %s2457_s7 = scalar_select %p2152_p5, 1, 0 }
   0xe   : > { %s2458_s8 = scalar_select %p2156_p6, 1, 0 }
   0xf   : > { %p2454_p9 = scmp.eq.s32.totalorder %s2135_s25, 0  ;;  %p2163_p10 = pnand %p1318_p7, %p183_p8 }
  0x10   : > { %s2072_s10 = smov [#allocation2]   ;;  %s2073_s13 = smov [#allocation5]  }
  0x11   : > { %s2459_s9 = scalar_select %p2163_p10, 1, 0 }
  0x12   : > { %s204_s11 = sshll.u32 %s2072_s10, 4  ;;  %p1890_p11 = pneg %p2163_p10  ;;  %s205_s11 = int_to_ptr.vmem [resolvable:$true] %s204_s11 }
  0x13   : > { %s217_s14 = sshll.u32 %s2073_s13, 4  ;;  %s1944_s17 = scalar_lea.hbm %s2451_s4, 2048  ;;  %s2175_s14 = int_to_ptr.vmem [resolvable:$true] %s217_s14 }
  0x14   : > { %p2171_p12 = pnand %p2454_p9, %p1890_p11  ;;  %p1945_p13 = scmp.ne.s32.totalorder %s2451_s4, %s1944_s17 }
  0x15   : > { %p1951_p3 = scmp.lt.u32.totalorder %s1944_s17, %s2451_s4 }
  0x16   : > { %p1946_p0 = pneg %p2171_p12 }
  0x18   : > { %p1947_p1 = pnand %p1946_p0, %p1945_p13 }
  0x1a   : > { %p1948_p2 = pneg %p1947_p1 }
  0x1c   : > { %p1953_p4 = pnand %p1951_p3, %p1948_p2 }
  0x1e   : > { %1956 = shalt.err (!%p1953_p4)
}
  0x1f   : > { %s1957_s28 = scalar_lea.vmem %s205_s11, 2048  ;;  %p1965_p9 = scmp.lt.s32.totalorder %s205_s11, %s205_s11 }
  0x20   : > { %p1958_p7 = scmp.ne.s32.totalorder %s205_s11, %s1957_s28  ;;  %p1966_p6 = scmp.lt.s32.totalorder %s1957_s28, %s1957_s28 }
  0x22   : > { %p1960_p8 = pnand %p1958_p7, %p1946_p0  ;;  %p1967_p5 = por %p1966_p6, %p1965_p9 }
  0x24   : > { %p1961_p11 = pneg %p1960_p8 }
  0x26   : > { %p1968_p10 = pnand %p1967_p5, %p1961_p11 }
  0x28   : > { %1971 = shalt.err (!%p1968_p10)
}
  0x29   : > { %s2074_s29 = smov 128   ;;  %s2075_s10 = smov 8  }
  0x2a   : > { %1893 = dma.hbm_to_vmem [thread:$0]  (!%p2171_p12), %s2451_s4, 2048, %s205_s11, [#allocation3], %s2074_s29, %s2074_s29, %s2075_s10  }
  0x2b   : > { %s1972_s18 = scalar_lea.hbm %s2452_s5, 2048 }
  0x2c   : > { %p1973_p13 = scmp.ne.s32.totalorder %s2452_s5, %s1972_s18  ;;  %p1979_p9 = scmp.lt.u32.totalorder %s1972_s18, %s2452_s5 }
  0x2e   : > { %p1975_p5 = pnand %p1973_p13, %p1946_p0 }
  0x30   : > { %p1976_p6 = pneg %p1975_p5 }
  0x32   : > { %p1981_p10 = pnand %p1979_p9, %p1976_p6 }
  0x34   : > { %1984 = shalt.err (!%p1981_p10)
}
  0x35   : > { %s1985_s11 = scalar_lea.vmem %s2175_s14, 2048  ;;  %p1993_p4 = scmp.lt.s32.totalorder %s2175_s14, %s2175_s14 }
  0x36   : > { %p1986_p1 = scmp.ne.s32.totalorder %s2175_s14, %s1985_s11  ;;  %p1994_p7 = scmp.lt.s32.totalorder %s1985_s11, %s1985_s11 }
  0x38   : > { %p1988_p2 = pnand %p1986_p1, %p1946_p0  ;;  %p1995_p8 = por %p1994_p7, %p1993_p4 }
  0x3a   : > { %p1989_p3 = pneg %p1988_p2 }
  0x3c   : > { %p1996_p11 = pnand %p1995_p8, %p1989_p3 }
  0x3e   : > { %1999 = shalt.err (!%p1996_p11)
}
  0x3f   : > { %1896 = dma.hbm_to_vmem [thread:$0]  (!%p2171_p12), %s2452_s5, 2048, %s2175_s14, [#allocation6], %s2074_s29, %s2074_s29, %s2075_s10  }
  0x40   : > { %p2461_p13 = scmp.ne.s32.totalorder %s2459_s9, 0 }
  0x41   : > { %p2462_p5 = scmp.eq.s32.totalorder (!%p2461_p13), %s2135_s25, 0 }
  0x42   : > { %242 = sbr.rel (%p2461_p13) target bundleno = 1206 (0x4b6), region = 44 }
  0x49   : > { %2045 = dma.done.wait (%p2462_p5), [#allocation3], 2048   ;;  %p2463_p0 = pmov %p2462_p5 }
  0x4b   : > { %2047 = vsyncadd (%p2463_p0), [#allocation3], 4294965248  ;;  %p2464_p6 = pmov %p2463_p0 }
  0x4c   : > { %p2465_p9 = pmov %p2463_p0 }
  0x4d   : > { %2049 = dma.done.wait (%p2464_p6), [#allocation6], 2048  }
  0x4e   : > { %2051 = vsyncadd (%p2465_p9), [#allocation6], 4294965248  ;;  %s1326_s12 = sshll.u32 %s2135_s25, 4  ;;  %vm301_vm0 = vcmask 130048   ;;  %v299_v0 = vld [vmem:[%s2448_s1] sm:$0xff]  ;;  %v300_v1 = vld [vmem:[%s2448_s1 + $0x8] sm:$0xff] }
  0x4f   : > { %p277_p10 = scmp.lt.s32.totalorder %s1326_s12, 31  ;;  %v1748_v3 = vpack.c.bf16 %v300_v1, %v299_v0  ;;  %v511_v6 = vld [vmem:[%s2449_s2] sm:$0xff]  ;;  %v512_v7 = vld [vmem:[%s2449_s2 + $0x8] sm:$0xff]  ;;  %v513_v8 = vld [vmem:[%s2449_s2 + $0x10] sm:$0xff]  ;;  %s1349_s9 = sshll.u32 %s2135_s25, 11 }
  0x50   : > { %v1752_v9 = vpack.c.bf16 %v512_v7, %v511_v6  ;;  %v514_v10 = vld [vmem:[%s2449_s2 + $0x18] sm:$0xff]  ;;  %v515_v13 = vld [vmem:[%s2449_s2 + $0x20] sm:$0xff]  ;;  %v516_v14 = vld [vmem:[%s2449_s2 + $0x28] sm:$0xff]  ;;  %s2398_s18 = scalar_lea.hbm %s2453_s6, %s1349_s9  ;;  %p2466_p1 = scmp.ne.s32.totalorder %s2457_s7, 0 }
  0x51   : > { %s2473_s12 = smov (!%p277_p10, %s1326_s12), 31  ;;  %1749 = vmatprep.subr.bf16.mxu0 %v1748_v3  ;;  %v1756_v12 = vpack.c.bf16 %v514_v10, %v513_v8  ;;  %v1760_v16 = vpack.c.bf16 %v516_v14, %v515_v13  ;;  %v517_v18 = vld [vmem:[%s2449_s2 + $0x30] sm:$0xff]  ;;  %v518_v19 = vld [vmem:[%s2449_s2 + $0x38] sm:$0xff]  ;;  %v519_v23 = vld [vmem:[%s2449_s2 + $0x40] sm:$0xff]  ;;  %s2076_s20 = smov [#allocation7]  }
  0x52   : > { %s1327_s14 = sshll.u32 %s2473_s12, 3  ;;  %1751 = vmatpush3.bf16.msra.mxu0 %v1748_v3  ;;  %1753 = vmatprep.subr.bf16.mxu1 %v1752_v9  ;;  %v1764_v21 = vpack.c.bf16 %v518_v19, %v517_v18  ;;  %v520_v24 = vld [vmem:[%s2449_s2 + $0x48] sm:$0xff]  ;;  %v521_v28 = vld [vmem:[%s2449_s2 + $0x50] sm:$0xff]  ;;  %v522_v29 = vld [vmem:[%s2449_s2 + $0x58] sm:$0xff]  ;;  %s273_s12 = sand.u32 1, %s2062_s22  }
  0x53   : > { %s2238_s10 = scalar_lea.vmem %s2447_s0, %s1327_s14  ;;  %1755 = vmatpush3.bf16.msra.mxu1 %v1752_v9  ;;  %v1768_v26 = vpack.c.bf16 %v520_v24, %v519_v23  ;;  %v1772_v31 = vpack.c.bf16 %v522_v29, %v521_v28  ;;  %v523_v33 = vld [vmem:[%s2449_s2 + $0x60] sm:$0xff]  ;;  %v524_v34 = vld [vmem:[%s2449_s2 + $0x68] sm:$0xff]  ;;  %v525_v40 = vld [vmem:[%s2449_s2 + $0x70] sm:$0xff]  ;;  %s2406_s25 = scalar_lea.sflag [#allocation4], %s273_s12 }
  0x54   : > { %v283_v2 = vld [vmem:[%s2238_s10] sm:$0xff]  ;;  %v284_v4 = vld [vmem:[%s2238_s10 + $0x8] sm:$0xff]  ;;  %v285_v5 = vld [vmem:[%s2238_s10 + $0x10] sm:$0xff]  ;;  %1757 = vmatprep.subr.bf16.mxu1 %v1756_v12  ;;  %v1776_v36 = vpack.c.bf16 %v524_v34, %v523_v33  ;;  %s2004_s26 = sshll.u32 %s2076_s20, 4  ;;  %s2005_s26 = int_to_ptr.vmem [resolvable:$false] %s2004_s26 }
  0x55   : > { %1500 = vmatprep.mubr.msk.f32.mxu0 %vm301_vm0, %v283_v2  ;;  %v286_v11 = vld [vmem:[%s2238_s10 + $0x18] sm:$0xff]  ;;  %v287_v15 = vld [vmem:[%s2238_s10 + $0x20] sm:$0xff]  ;;  %v288_v17 = vld [vmem:[%s2238_s10 + $0x28] sm:$0xff]  ;;  %s2006_s28 = scalar_lea.vmem %s2005_s26, 4096 }
  0x56   : > { %1501 = vmatmul.mubr.msk.f32.vlgmr.msra.gmra.mrb[0].mxu0 %vm301_vm0, %v284_v4  ;;  %v289_v20 = vld [vmem:[%s2238_s10 + $0x30] sm:$0xff]  ;;  %v290_v22 = vld [vmem:[%s2238_s10 + $0x38] sm:$0xff]  ;;  %v291_v25 = vld [vmem:[%s2238_s10 + $0x40] sm:$0xff] }
  0x57   : > { %1503 = vmatprep.mubr.msk.f32.mxu0 %vm301_vm0, %v285_v5  ;;  %1759 = vmatpush3.bf16.msra.mxu1 %v1756_v12  ;;  %v292_v27 = vld [vmem:[%s2238_s10 + $0x48] sm:$0xff]  ;;  %v293_v30 = vld [vmem:[%s2238_s10 + $0x50] sm:$0xff]  ;;  %v294_v32 = vld [vmem:[%s2238_s10 + $0x58] sm:$0xff] }
  0x58   : > { %1761 = vmatprep.subr.bf16.mxu1 %v1760_v16  ;;  %v295_v35 = vld [vmem:[%s2238_s10 + $0x60] sm:$0xff]  ;;  %v296_v37 = vld [vmem:[%s2238_s10 + $0x68] sm:$0xff]  ;;  %v297_v38 = vld [vmem:[%s2238_s10 + $0x70] sm:$0xff] }
  0x59   : > { %v298_v39 = vld [vmem:[%s2238_s10 + $0x78] sm:$0xff]  ;;  %v688_v43 = vld [vmem:[%s2450_s3] sm:$0xff]  ;;  %v689_v44 = vld [vmem:[%s2450_s3 + $0x8] sm:$0xff]  ;;  %s1325_s10 = sshll.u32 %s273_s12, 7 }
  0x5a   : > { %1504 = vmatmul.mubr.msk.f32.gmra.mrb[2].mxu0 %vm301_vm0, %v286_v11  ;;  %v526_v41 = vld [vmem:[%s2449_s2 + $0x78] sm:$0xff]  ;;  %v690_v45 = vld [vmem:[%s2450_s3 + $0x10] sm:$0xff]  ;;  %v1784_v46 = vpack.c.bf16 %v689_v44, %v688_v43  ;;  %v692_v49 = vld [vmem:[%s2450_s3 + $0x20] sm:$0xff]  ;;  %s2377_s14 = scalar_lea.vmem [#allocation7], %s1325_s10 }
  0x5b   : > { %1506 = vmatprep.mubr.msk.f32.mxu0 %vm301_vm0, %v287_v15  ;;  %1763 = vmatpush3.bf16.msra.mxu1 %v1760_v16  ;;  %v1780_v42 = vpack.c.bf16 %v526_v41, %v525_v40  ;;  %v691_v47 = vld [vmem:[%s2450_s3 + $0x18] sm:$0xff]  ;;  %v693_v50 = vld [vmem:[%s2450_s3 + $0x28] sm:$0xff]  ;;  %v694_v52 = vld [vmem:[%s2450_s3 + $0x30] sm:$0xff]  ;;  %s1233_s29 = sshll.u32 %s2377_s14, 4  ;;  %s2400_s29 = int_to_ptr.vmem [resolvable:$true] %s1233_s29 }
  0x5c   : > { %1765 = vmatprep.subr.bf16.mxu1 %v1764_v21  ;;  %v1788_v48 = vpack.c.bf16 %v691_v47, %v690_v45  ;;  %1785 = vmatprep.subr.bf16.mxu0 %v1784_v46  ;;  %v1792_v51 = vpack.c.bf16 %v693_v50, %v692_v49  ;;  %v695_v53 = vld [vmem:[%s2450_s3 + $0x38] sm:$0xff]  ;;  %v696_v55 = vld [vmem:[%s2450_s3 + $0x40] sm:$0xff]  ;;  %v697_v56 = vld [vmem:[%s2450_s3 + $0x48] sm:$0xff]  ;;  %s2000_s19 = scalar_lea.vmem %s2400_s29, 2048  ;;  %p2007_p4 = scmp.lt.s32.totalorder %s2400_s29, %s2005_s26 }
  0x5d   : > { %1787 = vmatpush3.bf16.msra.mxu0 %v1784_v46  ;;  %v1796_v54 = vpack.c.bf16 %v695_v53, %v694_v52  ;;  %v1800_v57 = vpack.c.bf16 %v697_v56, %v696_v55  ;;  %v698_v58 = vld [vmem:[%s2450_s3 + $0x50] sm:$0xff]  ;;  %v699_v59 = vld [vmem:[%s2450_s3 + $0x58] sm:$0xff]  ;;  %v700_v61 = vld [vmem:[%s2450_s3 + $0x60] sm:$0xff]  ;;  %p2001_p12 = scmp.ne.s32.totalorder %s2400_s29, %s2000_s19  ;;  %p2008_p7 = scmp.lt.s32.totalorder %s2006_s28, %s2000_s19 }
  0x5e   : > { %1507 = vmatmul.mubr.msk.f32.gmra.mrb[4].mxu0 %vm301_vm0, %v288_v17  ;;  %1789 = vmatprep.subr.bf16.mxu0 %v1788_v48  ;;  %v1804_v60 = vpack.c.bf16 %v699_v59, %v698_v58  ;;  %v701_v62 = vld [vmem:[%s2450_s3 + $0x68] sm:$0xff]  ;;  %v703_v33 = vld [vmem:[%s2450_s3 + $0x78] sm:$0xff]  ;;  %v869_v41 = vld [vmem:[#allocation2 + $0x20] sm:$0xff] }
  0x5f   : > { %1509 = vmatprep.mubr.msk.f32.mxu0 %vm301_vm0, %v289_v20  ;;  %1767 = vmatpush3.bf16.msra.mxu1 %v1764_v21  ;;  %v1808_v63 = vpack.c.bf16 %v701_v62, %v700_v61  ;;  %v871_v44 = vld [vmem:[#allocation2 + $0x30] sm:$0xff]  ;;  %v872_v45 = vld [vmem:[#allocation2 + $0x38] sm:$0xff]  ;;  %v873_v47 = vld [vmem:[#allocation2 + $0x40] sm:$0xff]  ;;  %p2002_p2 = pnand %p2001_p12, %p2466_p1  ;;  %p2009_p8 = por %p2008_p7, %p2007_p4 }
  0x60   : > { %1769 = vmatprep.subr.bf16.mxu1 %v1768_v26  ;;  %v1828_v46 = vpack.c.bf16 %v872_v45, %v871_v44  ;;  %v875_v50 = vld [vmem:[#allocation2 + $0x50] sm:$0xff]  ;;  %v877_v53 = vld [vmem:[#allocation2 + $0x60] sm:$0xff] }
  0x61   : > { %1791 = vmatpush3.bf16.msra.mxu0 %v1788_v48  ;;  %v874_v48 = vld [vmem:[#allocation2 + $0x48] sm:$0xff]  ;;  %v1054_v45 = vld [vmem:[#allocation5 + $0x60] sm:$0xff]  ;;  %p2003_p3 = pneg %p2002_p2 }
  0x62   : > { %1510 = vmatmul.mubr.msk.f32.gmra.mrb[6].mxu0 %vm301_vm0, %v290_v22  ;;  %1793 = vmatprep.subr.bf16.mxu0 %v1792_v51  ;;  %v1832_v49 = vpack.c.bf16 %v874_v48, %v873_v47 }
  0x63   : > { %1512 = vmatprep.mubr.msk.f32.mxu0 %vm301_vm0, %v291_v25  ;;  %1771 = vmatpush3.bf16.msra.mxu1 %v1768_v26  ;;  %p2010_p11 = pnand %p2009_p8, %p2003_p3 }
  0x64   : > { %1773 = vmatprep.subr.bf16.mxu1 %v1772_v31 }
  0x65   : > { %1795 = vmatpush3.bf16.msra.mxu0 %v1792_v51  ;;  %v876_v51 = vld [vmem:[#allocation2 + $0x58] sm:$0xff] }
  0x66   : > { %1513 = vmatmul.mubr.msk.f32.gmra.mrb[8].mxu0 %vm301_vm0, %v292_v27  ;;  %1797 = vmatprep.subr.bf16.mxu0 %v1796_v54  ;;  %v1836_v52 = vpack.c.bf16 %v876_v51, %v875_v50 }
  0x67   : > { %1515 = vmatprep.mubr.msk.f32.mxu0 %vm301_vm0, %v293_v30  ;;  %1775 = vmatpush3.bf16.msra.mxu1 %v1772_v31 }
  0x68   : > { %1777 = vmatprep.subr.bf16.mxu1 %v1776_v36 }
  0x69   : > { %1799 = vmatpush3.bf16.msra.mxu0 %v1796_v54  ;;  %v878_v54 = vld [vmem:[#allocation2 + $0x68] sm:$0xff] }
  0x6a   : > { %1516 = vmatmul.mubr.msk.f32.gmra.mrb[10].mxu0 %vm301_vm0, %v294_v32  ;;  %1801 = vmatprep.subr.bf16.mxu0 %v1800_v57  ;;  %v702_v32 = vld [vmem:[%s2450_s3 + $0x70] sm:$0xff]  ;;  %v1840_v55 = vpack.c.bf16 %v878_v54, %v877_v53 }
  0x6b   : > { %1518 = vmatprep.mubr.msk.f32.mxu0 %vm301_vm0, %v295_v35  ;;  %1779 = vmatpush3.bf16.msra.mxu1 %v1776_v36  ;;  %v1812_v34 = vpack.c.bf16 %v703_v33, %v702_v32  ;;  %v865_v35 = vld [vmem:[#allocation2] sm:$0xff]  ;;  %v866_v36 = vld [vmem:[#allocation2 + $0x8] sm:$0xff] }
  0x6c   : > { %1781 = vmatprep.subr.bf16.mxu1 %v1780_v42  ;;  %v1046_v33 = vld [vmem:[#allocation5 + $0x20] sm:$0xff] }
  0x6d   : > { %1803 = vmatpush3.bf16.msra.mxu0 %v1800_v57 }
  0x6e   : > { %1519 = vmatmul.mubr.msk.f32.gmra.mrb[12].mxu0 %vm301_vm0, %v296_v37  ;;  %1805 = vmatprep.subr.bf16.mxu0 %v1804_v60  ;;  %v867_v37 = vld [vmem:[#allocation2 + $0x10] sm:$0xff] }
  0x6f   : > { %1521 = vmatprep.mubr.msk.f32.mxu0 %vm301_vm0, %v297_v38  ;;  %1783 = vmatpush3.bf16.msra.mxu1 %v1780_v42  ;;  %v1816_v38 = vpack.c.bf16 %v866_v36, %v865_v35  ;;  %v870_v42 = vld [vmem:[#allocation2 + $0x28] sm:$0xff]  ;;  %v1048_v36 = vld [vmem:[#allocation5 + $0x30] sm:$0xff] }
  0x70   : > { %v1824_v43 = vpack.c.bf16 %v870_v42, %v869_v41  ;;  %v1052_v42 = vld [vmem:[#allocation5 + $0x50] sm:$0xff] }
  0x71   : > { %1807 = vmatpush3.bf16.msra.mxu0 %v1804_v60  ;;  %1817 = vmatprep.subr.bf16.mxu1 %v1816_v38 }
  0x72   : > { %1522 = vmatmul.mubr.msk.f32.gmra.mrb[14].mxu0 %vm301_vm0, %v298_v39  ;;  %1809 = vmatprep.subr.bf16.mxu0 %v1808_v63  ;;  %v868_v39 = vld [vmem:[#allocation2 + $0x18] sm:$0xff] }
  0x73   : > { %v1820_v40 = vpack.c.bf16 %v868_v39, %v867_v37  ;;  %v1049_v37 = vld [vmem:[#allocation5 + $0x38] sm:$0xff]  ;;  %v1050_v39 = vld [vmem:[#allocation5 + $0x40] sm:$0xff] }
  0x75   : > { %1811 = vmatpush3.bf16.msra.mxu0 %v1808_v63 }
  0x76   : > { %1813 = vmatprep.subr.bf16.mxu0 %v1812_v34 }
  0x79   : > { %1815 = vmatpush3.bf16.msra.mxu0 %v1812_v34  ;;  %v1047_v34 = vld [vmem:[#allocation5 + $0x28] sm:$0xff] }
  0x7a   : > { %v1856_v35 = vpack.c.bf16 %v1047_v34, %v1046_v33 }
 0x129   : > { %v1502_v0 = vpop.f32.mrb[0].mxu0 }
 0x12a   : > { %v416_v1 = vpop.f32.mrb[1].mxu0  ;;  %v496_v3 = vmax.f32 %v1502_v0, 0.0 }
 0x12b   : > { %v495_v2 = vmax.f32 %v416_v1, 0.0 }
 0x12d   : > { %v1505_v4 = vpop.f32.mrb[2].mxu0  ;;  %1556 = vmatprep.mubr.f32.mxu1 %v495_v2 }
 0x12e   : > { %v426_v5 = vpop.f32.mrb[3].mxu0  ;;  %1557 = vmatmul.mubr.f32.vlgmr.msra.gmra.mrb[0].mxu1 %v496_v3  ;;  %v498_v7 = vmax.f32 %v1505_v4, 0.0 }
 0x12f   : > { %v497_v6 = vmax.f32 %v426_v5, 0.0  ;;  %1819 = vmatpush3.bf16.msra.mxu1 %v1816_v38  ;;  %v1860_v38 = vpack.c.bf16 %v1049_v37, %v1048_v36 }
 0x130   : > { %1821 = vmatprep.subr.bf16.mxu1 %v1820_v40 }
 0x131   : > { %v1508_v8 = vpop.f32.mrb[4].mxu0  ;;  %1559 = vmatprep.mubr.f32.mxu1 %v497_v6 }
 0x132   : > { %v436_v9 = vpop.f32.mrb[5].mxu0  ;;  %1560 = vmatmul.mubr.f32.gmra.mrb[2].mxu1 %v498_v7  ;;  %v500_v11 = vmax.f32 %v1508_v8, 0.0 }
 0x133   : > { %v499_v10 = vmax.f32 %v436_v9, 0.0  ;;  %1823 = vmatpush3.bf16.msra.mxu1 %v1820_v40  ;;  %v1051_v40 = vld [vmem:[#allocation5 + $0x48] sm:$0xff] }
 0x134   : > { %1825 = vmatprep.subr.bf16.mxu1 %v1824_v43  ;;  %v1864_v41 = vpack.c.bf16 %v1051_v40, %v1050_v39 }
 0x135   : > { %v1511_v12 = vpop.f32.mrb[6].mxu0  ;;  %1562 = vmatprep.mubr.f32.mxu1 %v499_v10 }
 0x136   : > { %v446_v13 = vpop.f32.mrb[7].mxu0  ;;  %1563 = vmatmul.mubr.f32.gmra.mrb[4].mxu1 %v500_v11  ;;  %v502_v15 = vmax.f32 %v1511_v12, 0.0 }
 0x137   : > { %v501_v14 = vmax.f32 %v446_v13, 0.0  ;;  %1827 = vmatpush3.bf16.msra.mxu1 %v1824_v43  ;;  %v1053_v43 = vld [vmem:[#allocation5 + $0x58] sm:$0xff] }
 0x138   : > { %1829 = vmatprep.subr.bf16.mxu1 %v1828_v46  ;;  %v1868_v44 = vpack.c.bf16 %v1053_v43, %v1052_v42 }
 0x139   : > { %v1514_v16 = vpop.f32.mrb[8].mxu0  ;;  %1565 = vmatprep.mubr.f32.mxu1 %v501_v14 }
 0x13a   : > { %v456_v17 = vpop.f32.mrb[9].mxu0  ;;  %1566 = vmatmul.mubr.f32.gmra.mrb[6].mxu1 %v502_v15  ;;  %v504_v19 = vmax.f32 %v1514_v16, 0.0 }
 0x13b   : > { %v503_v18 = vmax.f32 %v456_v17, 0.0  ;;  %1831 = vmatpush3.bf16.msra.mxu1 %v1828_v46  ;;  %v1055_v46 = vld [vmem:[#allocation5 + $0x68] sm:$0xff] }
 0x13c   : > { %1833 = vmatprep.subr.bf16.mxu1 %v1832_v49  ;;  %v1872_v47 = vpack.c.bf16 %v1055_v46, %v1054_v45 }
 0x13d   : > { %v1517_v20 = vpop.f32.mrb[10].mxu0  ;;  %1568 = vmatprep.mubr.f32.mxu1 %v503_v18 }
 0x13e   : > { %v466_v21 = vpop.f32.mrb[11].mxu0  ;;  %1569 = vmatmul.mubr.f32.gmra.mrb[8].mxu1 %v504_v19  ;;  %v506_v23 = vmax.f32 %v1517_v20, 0.0 }
 0x13f   : > { %v505_v22 = vmax.f32 %v466_v21, 0.0  ;;  %1835 = vmatpush3.bf16.msra.mxu1 %v1832_v49 }
 0x140   : > { %1837 = vmatprep.subr.bf16.mxu1 %v1836_v52 }
 0x141   : > { %v1520_v24 = vpop.f32.mrb[12].mxu0  ;;  %1571 = vmatprep.mubr.f32.mxu1 %v505_v22 }
 0x142   : > { %v476_v25 = vpop.f32.mrb[13].mxu0  ;;  %1572 = vmatmul.mubr.f32.gmra.mrb[10].mxu1 %v506_v23  ;;  %v508_v27 = vmax.f32 %v1520_v24, 0.0  ;;  %v879_v24 = vld [vmem:[#allocation2 + $0x70] sm:$0xff] }
 0x143   : > { %v507_v26 = vmax.f32 %v476_v25, 0.0  ;;  %1839 = vmatpush3.bf16.msra.mxu1 %v1836_v52  ;;  %v880_v25 = vld [vmem:[#allocation2 + $0x78] sm:$0xff] }
 0x144   : > { %1841 = vmatprep.subr.bf16.mxu1 %v1840_v55 }
 0x145   : > { %v1523_v28 = vpop.f32.mrb[14].mxu0  ;;  %1574 = vmatprep.mubr.f32.mxu1 %v507_v26  ;;  %v1844_v26 = vpack.c.bf16 %v880_v25, %v879_v24 }
 0x146   : > { %v486_v29 = vpop.f32.mrb[15].mxu0  ;;  %1575 = vmatmul.mubr.f32.gmra.mrb[12].mxu1 %v508_v27  ;;  %v510_v31 = vmax.f32 %v1523_v28, 0.0  ;;  %v1042_v27 = vld [vmem:[#allocation5] sm:$0xff]  ;;  %v1043_v28 = vld [vmem:[#allocation5 + $0x8] sm:$0xff] }
 0x147   : > { %v509_v30 = vmax.f32 %v486_v29, 0.0  ;;  %1843 = vmatpush3.bf16.msra.mxu1 %v1840_v55  ;;  %v1044_v29 = vld [vmem:[#allocation5 + $0x10] sm:$0xff] }
 0x148   : > { %1845 = vmatprep.subr.bf16.mxu1 %v1844_v26 }
 0x149   : > { %1577 = vmatprep.mubr.f32.mxu1 %v509_v30  ;;  %v1848_v30 = vpack.c.bf16 %v1043_v28, %v1042_v27 }
 0x14a   : > { %1578 = vmatmul.mubr.f32.gmra.mrb[14].mxu1 %v510_v31  ;;  %v1045_v31 = vld [vmem:[#allocation5 + $0x18] sm:$0xff] }
 0x14b   : > { %1847 = vmatpush3.bf16.msra.mxu1 %v1844_v26  ;;  %v1852_v32 = vpack.c.bf16 %v1045_v31, %v1044_v29  ;;  %1849 = vmatprep.subr.bf16.mxu0 %v1848_v30 }
 0x201   : > { %v1558_v56 = vpop.f32.mrb[0].mxu1 }
 0x202   : > { %v593_v57 = vpop.f32.mrb[1].mxu1  ;;  %v673_v59 = vmax.f32 %v1558_v56, 0.0 }
 0x203   : > { %v672_v58 = vmax.f32 %v593_v57, 0.0 }
 0x205   : > { %v1561_v60 = vpop.f32.mrb[2].mxu1  ;;  %1612 = vmatprep.mubr.f32.mxu0 %v672_v58 }
 0x206   : > { %v603_v61 = vpop.f32.mrb[3].mxu1  ;;  %1613 = vmatmul.mubr.f32.vlgmr.msra.gmra.mrb[16].mxu0 %v673_v59  ;;  %v675_v63 = vmax.f32 %v1561_v60, 0.0 }
 0x207   : > { %v674_v62 = vmax.f32 %v603_v61, 0.0  ;;  %1851 = vmatpush3.bf16.msra.mxu0 %v1848_v30 }
 0x208   : > { %1853 = vmatprep.subr.bf16.mxu0 %v1852_v32 }
 0x209   : > { %v1564_v0 = vpop.f32.mrb[4].mxu1  ;;  %1615 = vmatprep.mubr.f32.mxu0 %v674_v62 }
 0x20a   : > { %v613_v1 = vpop.f32.mrb[5].mxu1  ;;  %1616 = vmatmul.mubr.f32.gmra.mrb[18].mxu0 %v675_v63  ;;  %v677_v3 = vmax.f32 %v1564_v0, 0.0 }
 0x20b   : > { %v676_v2 = vmax.f32 %v613_v1, 0.0  ;;  %1855 = vmatpush3.bf16.msra.mxu0 %v1852_v32 }
 0x20c   : > { %1857 = vmatprep.subr.bf16.mxu0 %v1856_v35 }
 0x20d   : > { %v1567_v4 = vpop.f32.mrb[6].mxu1  ;;  %1618 = vmatprep.mubr.f32.mxu0 %v676_v2 }
 0x20e   : > { %v623_v5 = vpop.f32.mrb[7].mxu1  ;;  %1619 = vmatmul.mubr.f32.gmra.mrb[20].mxu0 %v677_v3  ;;  %v679_v7 = vmax.f32 %v1567_v4, 0.0 }
 0x20f   : > { %v678_v6 = vmax.f32 %v623_v5, 0.0  ;;  %1859 = vmatpush3.bf16.msra.mxu0 %v1856_v35 }
 0x210   : > { %1861 = vmatprep.subr.bf16.mxu0 %v1860_v38 }
 0x211   : > { %v1570_v8 = vpop.f32.mrb[8].mxu1  ;;  %1621 = vmatprep.mubr.f32.mxu0 %v678_v6 }
 0x212   : > { %v633_v9 = vpop.f32.mrb[9].mxu1  ;;  %1622 = vmatmul.mubr.f32.gmra.mrb[22].mxu0 %v679_v7  ;;  %v681_v11 = vmax.f32 %v1570_v8, 0.0 }
 0x213   : > { %v680_v10 = vmax.f32 %v633_v9, 0.0  ;;  %1863 = vmatpush3.bf16.msra.mxu0 %v1860_v38 }
 0x214   : > { %1865 = vmatprep.subr.bf16.mxu0 %v1864_v41 }
 0x215   : > { %v1573_v12 = vpop.f32.mrb[10].mxu1  ;;  %1624 = vmatprep.mubr.f32.mxu0 %v680_v10 }
 0x216   : > { %v643_v13 = vpop.f32.mrb[11].mxu1  ;;  %1625 = vmatmul.mubr.f32.gmra.mrb[24].mxu0 %v681_v11  ;;  %v683_v15 = vmax.f32 %v1573_v12, 0.0 }
 0x217   : > { %v682_v14 = vmax.f32 %v643_v13, 0.0  ;;  %1867 = vmatpush3.bf16.msra.mxu0 %v1864_v41 }
 0x218   : > { %1869 = vmatprep.subr.bf16.mxu0 %v1868_v44 }
 0x219   : > { %v1576_v16 = vpop.f32.mrb[12].mxu1  ;;  %1627 = vmatprep.mubr.f32.mxu0 %v682_v14 }
 0x21a   : > { %v653_v17 = vpop.f32.mrb[13].mxu1  ;;  %1628 = vmatmul.mubr.f32.gmra.mrb[26].mxu0 %v683_v15  ;;  %v685_v19 = vmax.f32 %v1576_v16, 0.0  ;;  %v1056_v16 = vld [vmem:[#allocation5 + $0x70] sm:$0xff] }
 0x21b   : > { %v684_v18 = vmax.f32 %v653_v17, 0.0  ;;  %1871 = vmatpush3.bf16.msra.mxu0 %v1868_v44  ;;  %v1057_v17 = vld [vmem:[#allocation5 + $0x78] sm:$0xff] }
 0x21c   : > { %1873 = vmatprep.subr.bf16.mxu0 %v1872_v47 }
 0x21d   : > { %v1579_v20 = vpop.f32.mrb[14].mxu1  ;;  %1630 = vmatprep.mubr.f32.mxu0 %v684_v18  ;;  %v1876_v18 = vpack.c.bf16 %v1057_v17, %v1056_v16 }
 0x21e   : > { %v663_v21 = vpop.f32.mrb[15].mxu1  ;;  %1631 = vmatmul.mubr.f32.gmra.mrb[28].mxu0 %v685_v19  ;;  %v687_v23 = vmax.f32 %v1579_v20, 0.0 }
 0x21f   : > { %v686_v22 = vmax.f32 %v663_v21, 0.0  ;;  %1875 = vmatpush3.bf16.msra.mxu0 %v1872_v47 }
 0x220   : > { %1877 = vmatprep.subr.bf16.mxu0 %v1876_v18 }
 0x221   : > { %1633 = vmatprep.mubr.f32.mxu0 %v686_v22 }
 0x222   : > { %1634 = vmatmul.mubr.f32.gmra.mrb[30].mxu0 %v687_v23 }
 0x223   : > { %1879 = vmatpush3.bf16.msra.mxu0 %v1876_v18 }
 0x2d9   : > { %v1614_v48 = vpop.f32.mrb[16].mxu0 }
 0x2da   : > { %v770_v49 = vpop.f32.mrb[17].mxu0  ;;  %v850_v51 = vmax.f32 %v1614_v48, 0.0 }
 0x2db   : > { %v849_v50 = vmax.f32 %v770_v49, 0.0 }
 0x2dd   : > { %v1617_v52 = vpop.f32.mrb[18].mxu0  ;;  %1668 = vmatprep.mubr.f32.mxu1 %v849_v50 }
 0x2de   : > { %v780_v53 = vpop.f32.mrb[19].mxu0  ;;  %1669 = vmatmul.mubr.f32.vlgmr.msra.gmra.mrb[16].mxu1 %v850_v51  ;;  %v852_v55 = vmax.f32 %v1617_v52, 0.0 }
 0x2df   : > { %v851_v54 = vmax.f32 %v780_v53, 0.0 }
 0x2e1   : > { %v1620_v56 = vpop.f32.mrb[20].mxu0  ;;  %1671 = vmatprep.mubr.f32.mxu1 %v851_v54 }
 0x2e2   : > { %v790_v57 = vpop.f32.mrb[21].mxu0  ;;  %1672 = vmatmul.mubr.f32.gmra.mrb[18].mxu1 %v852_v55  ;;  %v854_v59 = vmax.f32 %v1620_v56, 0.0 }
 0x2e3   : > { %v853_v58 = vmax.f32 %v790_v57, 0.0 }
 0x2e5   : > { %v1623_v60 = vpop.f32.mrb[22].mxu0  ;;  %1674 = vmatprep.mubr.f32.mxu1 %v853_v58 }
 0x2e6   : > { %v800_v61 = vpop.f32.mrb[23].mxu0  ;;  %1675 = vmatmul.mubr.f32.gmra.mrb[20].mxu1 %v854_v59  ;;  %v856_v63 = vmax.f32 %v1623_v60, 0.0 }
 0x2e7   : > { %v855_v62 = vmax.f32 %v800_v61, 0.0 }
 0x2e9   : > { %v1626_v0 = vpop.f32.mrb[24].mxu0  ;;  %1677 = vmatprep.mubr.f32.mxu1 %v855_v62 }
 0x2ea   : > { %v810_v1 = vpop.f32.mrb[25].mxu0  ;;  %1678 = vmatmul.mubr.f32.gmra.mrb[22].mxu1 %v856_v63  ;;  %v858_v3 = vmax.f32 %v1626_v0, 0.0 }
 0x2eb   : > { %v857_v2 = vmax.f32 %v810_v1, 0.0 }
 0x2ed   : > { %v1629_v4 = vpop.f32.mrb[26].mxu0  ;;  %1680 = vmatprep.mubr.f32.mxu1 %v857_v2 }
 0x2ee   : > { %v820_v5 = vpop.f32.mrb[27].mxu0  ;;  %1681 = vmatmul.mubr.f32.gmra.mrb[24].mxu1 %v858_v3  ;;  %v860_v7 = vmax.f32 %v1629_v4, 0.0 }
 0x2ef   : > { %v859_v6 = vmax.f32 %v820_v5, 0.0 }
 0x2f1   : > { %v1632_v8 = vpop.f32.mrb[28].mxu0  ;;  %1683 = vmatprep.mubr.f32.mxu1 %v859_v6 }
 0x2f2   : > { %v830_v9 = vpop.f32.mrb[29].mxu0  ;;  %1684 = vmatmul.mubr.f32.gmra.mrb[26].mxu1 %v860_v7  ;;  %v862_v11 = vmax.f32 %v1632_v8, 0.0 }
 0x2f3   : > { %v861_v10 = vmax.f32 %v830_v9, 0.0 }
 0x2f5   : > { %v1635_v12 = vpop.f32.mrb[30].mxu0  ;;  %1686 = vmatprep.mubr.f32.mxu1 %v861_v10 }
 0x2f6   : > { %v840_v13 = vpop.f32.mrb[31].mxu0  ;;  %1687 = vmatmul.mubr.f32.gmra.mrb[28].mxu1 %v862_v11  ;;  %v864_v15 = vmax.f32 %v1635_v12, 0.0 }
 0x2f7   : > { %v863_v14 = vmax.f32 %v840_v13, 0.0 }
 0x2f9   : > { %1689 = vmatprep.mubr.f32.mxu1 %v863_v14 }
 0x2fa   : > { %1690 = vmatmul.mubr.f32.gmra.mrb[30].mxu1 %v864_v15 }
 0x3b1   : > { %v1670_v19 = vpop.f32.mrb[16].mxu1 }
 0x3b2   : > { %v947_v20 = vpop.f32.mrb[17].mxu1  ;;  %v1027_v22 = vmax.f32 %v1670_v19, 0.0 }
 0x3b3   : > { %v1026_v21 = vmax.f32 %v947_v20, 0.0 }
 0x3b5   : > { %v1673_v23 = vpop.f32.mrb[18].mxu1  ;;  %1724 = vmatprep.mubr.f32.mxu0 %v1026_v21 }
 0x3b6   : > { %v957_v24 = vpop.f32.mrb[19].mxu1  ;;  %1725 = vmatmul.mubr.f32.vlgmr.msra.gmra.mrb[32].mxu0 %v1027_v22  ;;  %v1029_v26 = vmax.f32 %v1673_v23, 0.0 }
 0x3b7   : > { %v1028_v25 = vmax.f32 %v957_v24, 0.0 }
 0x3b9   : > { %v1676_v27 = vpop.f32.mrb[20].mxu1  ;;  %1727 = vmatprep.mubr.f32.mxu0 %v1028_v25 }
 0x3ba   : > { %v967_v28 = vpop.f32.mrb[21].mxu1  ;;  %1728 = vmatmul.mubr.f32.gmra.mrb[34].mxu0 %v1029_v26  ;;  %v1031_v30 = vmax.f32 %v1676_v27, 0.0 }
 0x3bb   : > { %v1030_v29 = vmax.f32 %v967_v28, 0.0 }
 0x3bd   : > { %v1679_v31 = vpop.f32.mrb[22].mxu1  ;;  %1730 = vmatprep.mubr.f32.mxu0 %v1030_v29 }
 0x3be   : > { %v977_v32 = vpop.f32.mrb[23].mxu1  ;;  %1731 = vmatmul.mubr.f32.gmra.mrb[36].mxu0 %v1031_v30  ;;  %v1033_v34 = vmax.f32 %v1679_v31, 0.0 }
 0x3bf   : > { %v1032_v33 = vmax.f32 %v977_v32, 0.0 }
 0x3c1   : > { %v1682_v35 = vpop.f32.mrb[24].mxu1  ;;  %1733 = vmatprep.mubr.f32.mxu0 %v1032_v33 }
 0x3c2   : > { %v987_v36 = vpop.f32.mrb[25].mxu1  ;;  %1734 = vmatmul.mubr.f32.gmra.mrb[38].mxu0 %v1033_v34  ;;  %v1035_v38 = vmax.f32 %v1682_v35, 0.0 }
 0x3c3   : > { %v1034_v37 = vmax.f32 %v987_v36, 0.0 }
 0x3c5   : > { %v1685_v39 = vpop.f32.mrb[26].mxu1  ;;  %1736 = vmatprep.mubr.f32.mxu0 %v1034_v37 }
 0x3c6   : > { %v997_v40 = vpop.f32.mrb[27].mxu1  ;;  %1737 = vmatmul.mubr.f32.gmra.mrb[40].mxu0 %v1035_v38  ;;  %v1037_v42 = vmax.f32 %v1685_v39, 0.0 }
 0x3c7   : > { %v1036_v41 = vmax.f32 %v997_v40, 0.0 }
 0x3c9   : > { %v1688_v43 = vpop.f32.mrb[28].mxu1  ;;  %1739 = vmatprep.mubr.f32.mxu0 %v1036_v41 }
 0x3ca   : > { %v1007_v44 = vpop.f32.mrb[29].mxu1  ;;  %1740 = vmatmul.mubr.f32.gmra.mrb[42].mxu0 %v1037_v42  ;;  %v1039_v46 = vmax.f32 %v1688_v43, 0.0 }
 0x3cb   : > { %v1038_v45 = vmax.f32 %v1007_v44, 0.0 }
 0x3cd   : > { %v1691_v47 = vpop.f32.mrb[30].mxu1  ;;  %1742 = vmatprep.mubr.f32.mxu0 %v1038_v45 }
 0x3ce   : > { %v1017_v48 = vpop.f32.mrb[31].mxu1  ;;  %1743 = vmatmul.mubr.f32.gmra.mrb[44].mxu0 %v1039_v46  ;;  %v1041_v50 = vmax.f32 %v1691_v47, 0.0 }
 0x3cf   : > { %v1040_v49 = vmax.f32 %v1017_v48, 0.0 }
 0x3d1   : > { %1745 = vmatprep.mubr.f32.mxu0 %v1040_v49 }
 0x3d2   : > { %1746 = vmatmul.mubr.f32.gmra.mrb[46].mxu0 %v1041_v50 }
 0x489   : > { %v1726_v51 = vpop.f32.mrb[32].mxu0 }
 0x48a   : > { %1204 = vst [vmem:[%s2377_s14 + $0x8] sm:$0xff] %v1726_v51  ;;  %v1124_v52 = vpop.f32.mrb[33].mxu0 }
 0x48b   : > { %1203 = vst [vmem:[%s2377_s14] sm:$0xff] %v1124_v52 }
 0x48d   : > { %v1729_v53 = vpop.f32.mrb[34].mxu0 }
 0x48e   : > { %1206 = vst [vmem:[%s2377_s14 + $0x18] sm:$0xff] %v1729_v53  ;;  %v1134_v54 = vpop.f32.mrb[35].mxu0 }
 0x48f   : > { %1205 = vst [vmem:[%s2377_s14 + $0x10] sm:$0xff] %v1134_v54 }
 0x491   : > { %v1732_v55 = vpop.f32.mrb[36].mxu0 }
 0x492   : > { %1208 = vst [vmem:[%s2377_s14 + $0x28] sm:$0xff] %v1732_v55  ;;  %v1144_v56 = vpop.f32.mrb[37].mxu0 }
 0x493   : > { %1207 = vst [vmem:[%s2377_s14 + $0x20] sm:$0xff] %v1144_v56 }
 0x495   : > { %v1735_v57 = vpop.f32.mrb[38].mxu0 }
 0x496   : > { %1210 = vst [vmem:[%s2377_s14 + $0x38] sm:$0xff] %v1735_v57  ;;  %v1154_v58 = vpop.f32.mrb[39].mxu0 }
 0x497   : > { %1209 = vst [vmem:[%s2377_s14 + $0x30] sm:$0xff] %v1154_v58 }
 0x499   : > { %v1738_v59 = vpop.f32.mrb[40].mxu0 }
 0x49a   : > { %1212 = vst [vmem:[%s2377_s14 + $0x48] sm:$0xff] %v1738_v59  ;;  %v1164_v60 = vpop.f32.mrb[41].mxu0 }
 0x49b   : > { %1211 = vst [vmem:[%s2377_s14 + $0x40] sm:$0xff] %v1164_v60 }
 0x49d   : > { %v1741_v61 = vpop.f32.mrb[42].mxu0 }
 0x49e   : > { %1214 = vst [vmem:[%s2377_s14 + $0x58] sm:$0xff] %v1741_v61  ;;  %v1174_v62 = vpop.f32.mrb[43].mxu0 }
 0x49f   : > { %1213 = vst [vmem:[%s2377_s14 + $0x50] sm:$0xff] %v1174_v62 }
 0x4a1   : > { %v1744_v63 = vpop.f32.mrb[44].mxu0 }
 0x4a2   : > { %1216 = vst [vmem:[%s2377_s14 + $0x68] sm:$0xff] %v1744_v63  ;;  %v1184_v0 = vpop.f32.mrb[45].mxu0 }
 0x4a3   : > { %1215 = vst [vmem:[%s2377_s14 + $0x60] sm:$0xff] %v1184_v0 }
 0x4a5   : > { %v1747_v1 = vpop.f32.mrb[46].mxu0 }
 0x4a6   : > { %1218 = vst [vmem:[%s2377_s14 + $0x78] sm:$0xff] %v1747_v1  ;;  %v1194_v2 = vpop.f32.mrb[47].mxu0 }
 0x4a7   : > { %1217 = vst [vmem:[%s2377_s14 + $0x70] sm:$0xff] %v1194_v2 }
 0x4a8   : > { %2013 = shalt.err (!%p2010_p11)
}
 0x4a9   : > { %s2014_s11 = scalar_lea.hbm %s2398_s18, 2048  ;;  %s2018_s12 = scalar_lea.hbm %s2453_s6, 4096 }
 0x4aa   : > { %p2015_p13 = scmp.ne.s32.totalorder %s2398_s18, %s2014_s11  ;;  %p2019_p6 = scmp.lt.u32.totalorder %s2398_s18, %s2453_s6 }
 0x4ab   : > { %p2020_p9 = scmp.lt.u32.totalorder %s2018_s12, %s2014_s11  ;;  %p2022_p12 = scmp.lt.u32.totalorder %s2014_s11, %s2398_s18 }
 0x4ac   : > { %p2016_p5 = pnand %p2015_p13, %p2466_p1 }
 0x4ad   : > { %p2021_p10 = por %p2020_p9, %p2019_p6 }
 0x4ae   : > { %p2017_p0 = pneg %p2016_p5 }
 0x4af   : > { %p2023_p2 = por %p2022_p12, %p2021_p10 }
 0x4b1   : > { %p2024_p3 = pnand %p2023_p2, %p2017_p0 }
 0x4b3   : > { %2027 = shalt.err (!%p2024_p3)
}
 0x4b4   : > { %s2077_s9 = smov 128   ;;  %s2078_s16 = smov 8  }
 0x4b5   : > { %1888 = dma.vmem_to_hbm [thread:$0]  (%p2466_p1), %s2400_s29, 2048, %s2398_s18, %s2406_s25, %s2077_s9, %s2077_s9, %s2078_s16  }
 0x4b6 PF: > { %p1905_p4 = scmp.ge.s32.totalorder %s2070_s24, 2  ;;  %s1248_s17 = sand.u32 1, %s2058_s21  }
 0x4b7   : > { %p2467_p7 = scmp.ne.s32.totalorder %s2458_s8, 0  ;;  %s1249_s19 = scalar_lea.sflag [#allocation4], %s1248_s17 }
 0x4b9   : > { %p1898_p8 = pnand %p1905_p4, %p2467_p7 }
 0x4bb   : > { %2053 = dma.done.wait (!%p1898_p8), %s1249_s19, 2048  }
 0x4bc   : > { %2055 = vsyncadd (!%p1898_p8), %s1249_s19, 4294965248  ;;  %p18_p11 = scmp.ge.s32.totalorder %s2139_s27, 4   ;;  %s2468_s21 = smov %s2062_s22 }
 0x4bd   : > { %s2469_s22 = smov %s2066_s23  ;;  %s2470_s23 = smov %s2150_s30 }
 0x4be   : > { %s2471_s24 = smov %s2139_s27  ;;  %20 = sbr.rel (!%p18_p11) target bundleno = 5 (0x5), region = 88 }
 0x4c5   :  { %1254 = vsyncpa [#allocation3], 1 }
 0x4c6   :  { %1256 = vsyncpa [#allocation3 + $0x1], 1 }
 0x4c7   :  { %1257 = vsyncpa [#allocation6], 1 }
 0x4c8   :  { %1258 = vsyncpa [#allocation4], 1 }
 0x4c9   :  { %1260 = vsyncpa [#allocation4 + $0x1], 1 }

</bundles_post_ra>
